<compile_context>
chip_gen: v7x
topology: tpu7x:2x2x1
jax: 0.10.0
libtpu: 0.0.40
codegen_flags: <defaults>
</compile_context>

<pallas_src>
import jax
import jax.numpy as jnp
from jax.experimental import pallas as pl
from jax.experimental.pallas import tpu as pltpu


def network_kernel(uid_ref, iid_ref,                 # (TB, 1) int32 ids
                   utabf_ref, itabf_ref, b1_ref,     # fused gather+fc1 tables, bias
                   w2_ref, b2_ref,                   # fc2 (bf16) + bias (f32)
                   w3_ref, b3_ref,                   # head row (1, H2) + bias
                   o_ref):                           # (TB, 1) output
    TB = uid_ref.shape[0]
    n_users = utabf_ref.shape[0]
    n_items = itabf_ref.shape[0]

    uid = uid_ref[...]                               # (TB, 1)
    iid = iid_ref[...]                               # (TB, 1)

    # Vectorized gather as a one-hot matmul.  The one-hot is exact in bf16, so
    # dot(onehot, bf16_table) with f32 accumulation selects bf16 table rows.
    onehot_u = (jax.lax.broadcasted_iota(jnp.int32, (TB, n_users), 1) == uid
                ).astype(jnp.bfloat16)
    onehot_i = (jax.lax.broadcasted_iota(jnp.int32, (TB, n_items), 1) == iid
                ).astype(jnp.bfloat16)

    # Fused embedding-gather + fc1 (tables pre-multiplied by W1 halves), relu.
    h1 = jnp.maximum(
        jnp.dot(onehot_u, utabf_ref[...], preferred_element_type=jnp.float32)
        + jnp.dot(onehot_i, itabf_ref[...], preferred_element_type=jnp.float32)
        + b1_ref[...],
        0.0)

    # fc2 -> relu (bf16 MXU operands, f32 accumulation).
    h2 = jnp.maximum(
        jnp.dot(h1.astype(jnp.bfloat16), w2_ref[...],
                preferred_element_type=jnp.float32)
        + b2_ref[...],
        0.0)

    # out_layer: VPU multiply + lane reduction instead of an N=1 MXU matmul.
    o_ref[...] = jnp.sum(h2 * w3_ref[...], axis=-1, keepdims=True) + b3_ref[...]


def _pad_rows_to_128(t):
    """Zero-pad the leading (row) dim up to a multiple of 128 (never selected)."""
    r = t.shape[0]
    rp = ((r + 127) // 128) * 128
    if rp == r:
        return t
    return jnp.pad(t, ((0, rp - r), (0, 0)))


def network_forward(user_ids, item_ids, params, *, tb=None):
    utab, itab, w1, b1, w2, b2, w3, b3 = params
    B = user_ids.shape[0]
    F = utab.shape[1]

    if tb is None:
        # Few, large grid steps; keep >= 2 steps so the "parallel" batch axis
        # still feeds both TensorCores on v7x.
        tb = max(128, B // 2) if B >= 256 else B
    assert B % tb == 0, (B, tb)

    uid = user_ids.reshape(B, 1).astype(jnp.int32)
    iid = item_ids.reshape(B, 1).astype(jnp.int32)

    # Algebraic fusion: (onehot @ T) @ W1_half == onehot @ (T @ W1_half).
    # Precompute in f32, store bf16 for the MXU; pad rows to a lane-clean 128x.
    utab_f = _pad_rows_to_128((utab @ w1[:F]).astype(jnp.bfloat16))
    itab_f = _pad_rows_to_128((itab @ w1[F:]).astype(jnp.bfloat16))
    w2_b = w2.astype(jnp.bfloat16)
    w3_row = w3.reshape(1, -1)                       # (1, H2) f32 for VPU head

    def resident(a):
        nd = a.ndim
        return pl.BlockSpec(a.shape, lambda b, _nd=nd: (0,) * _nd)

    batch_spec = pl.BlockSpec((tb, 1), lambda b: (b, 0))

    return pl.pallas_call(
        network_kernel,
        out_shape=jax.ShapeDtypeStruct((B, 1), jnp.float32),
        grid=(B // tb,),
        in_specs=[
            batch_spec, batch_spec,                  # uid, iid tiles
            resident(utab_f), resident(itab_f), resident(b1),
            resident(w2_b), resident(b2),
            resident(w3_row), resident(b3),
        ],
        out_specs=batch_spec,
        compiler_params=pltpu.CompilerParams(
            dimension_semantics=("parallel",)),      # 2-TC sharding on v7x
    )(uid, iid, utab_f, itab_f, b1, w2_b, b2, w3_row, b3)


def init_params(key, num_users, num_items, num_factors, hidden):
    ks = jax.random.split(key, 8)

    def xavier(k, fan_in, fan_out):
        bound = (6.0 / (fan_in + fan_out)) ** 0.5
        return jax.random.uniform(k, (fan_in, fan_out), jnp.float32, -bound, bound)

    def lin_bias(k, fan_in, fan_out):
        bound = 1.0 / (fan_in ** 0.5)
        return jax.random.uniform(k, (1, fan_out), jnp.float32, -bound, bound)

    # embedding.weight.data.uniform_(-0.05, 0.05)
    utab = jax.random.uniform(ks[0], (num_users + 1, num_factors), jnp.float32, -0.05, 0.05)
    itab = jax.random.uniform(ks[1], (num_items + 1, num_factors), jnp.float32, -0.05, 0.05)

    w1 = xavier(ks[2], 2 * num_factors, hidden[0])
    b1 = lin_bias(ks[3], 2 * num_factors, hidden[0])
    w2 = xavier(ks[4], hidden[0], hidden[1])
    b2 = lin_bias(ks[5], hidden[0], hidden[1])
    w3 = xavier(ks[6], hidden[1], 1)
    b3 = lin_bias(ks[7], hidden[1], 1)
    return (utab, itab, w1, b1, w2, b2, w3, b3)


def reference_forward(user_ids, item_ids, params):
    utab, itab, w1, b1, w2, b2, w3, b3 = params
    u = utab[user_ids]
    i = itab[item_ids]
    x = jnp.concatenate([u, i], axis=1)
    h1 = jnp.maximum(x @ w1 + b1, 0.0)
    h2 = jnp.maximum(h1 @ w2 + b2, 0.0)
    return h2 @ w3 + b3


if __name__ == "__main__":
    key = jax.random.PRNGKey(0)
    # Lane/MXU-friendly small sizes: tables (128, 128) / (192->256, 128),
    # hidden dims multiples of 128, batch tiled in 128-row M tiles.
    num_users, num_items = 127, 191
    num_factors, hidden = 128, [128, 128]
    batch = 256

    pkey, ukey, ikey = jax.random.split(key, 3)
    params = init_params(pkey, num_users, num_items, num_factors, hidden)
    user_ids = jax.random.randint(ukey, (batch,), 0, num_users + 1, dtype=jnp.int32)
    item_ids = jax.random.randint(ikey, (batch,), 0, num_items + 1, dtype=jnp.int32)

    out = network_forward(user_ids, item_ids, params)
    jax.block_until_ready(out)

    ref = reference_forward(user_ids, item_ids, params)
    assert out.shape == (batch, 1), out.shape
    max_err = float(jnp.max(jnp.abs(out - ref)))
    # Tolerance accounts for bf16 quantization of the fused tables / W2 MXU
    # operands (f32 accumulation); observed error is O(1e-4) for these scales.
    assert max_err < 2e-3, max_err

    print("KERNEL_OK")
</pallas_src>

<mosaic_0001>
module attributes {stable_mosaic.version = 11 : i64} {
  func.func @network_kernel(%arg0: i32, %arg1: memref<128x1xi32, #tpu.memory_space<vmem>>, %arg2: memref<128x1xi32, #tpu.memory_space<vmem>>, %arg3: memref<128x128xbf16, #tpu.memory_space<vmem>>, %arg4: memref<256x128xbf16, #tpu.memory_space<vmem>>, %arg5: memref<1x128xf32, #tpu.memory_space<vmem>>, %arg6: memref<128x128xbf16, #tpu.memory_space<vmem>>, %arg7: memref<1x128xf32, #tpu.memory_space<vmem>>, %arg8: memref<1x128xf32, #tpu.memory_space<vmem>>, %arg9: memref<1x1xf32, #tpu.memory_space<vmem>>, %arg10: memref<128x1xf32, #tpu.memory_space<vmem>>) attributes {dimension_semantics = [#tpu.dimension_semantics<parallel>], iteration_bounds = array<i64: 2>, scalar_prefetch = 0 : i64, scratch_operands = 0 : i64, tpu.core_type = #tpu.core_type<tc>, window_params = [{transform_indices = @transform_0, window_bounds = array<i64: 128, 1>}, {transform_indices = @transform_1, window_bounds = array<i64: 128, 1>}, {pipeline_mode = #tpu.pipeline_mode<synchronous>, transform_indices = @transform_2, window_bounds = array<i64: 128, 128>}, {pipeline_mode = #tpu.pipeline_mode<synchronous>, transform_indices = @transform_3, window_bounds = array<i64: 256, 128>}, {pipeline_mode = #tpu.pipeline_mode<synchronous>, transform_indices = @transform_4, window_bounds = array<i64: 1, 128>}, {pipeline_mode = #tpu.pipeline_mode<synchronous>, transform_indices = @transform_5, window_bounds = array<i64: 128, 128>}, {pipeline_mode = #tpu.pipeline_mode<synchronous>, transform_indices = @transform_6, window_bounds = array<i64: 1, 128>}, {pipeline_mode = #tpu.pipeline_mode<synchronous>, transform_indices = @transform_7, window_bounds = array<i64: 1, 128>}, {pipeline_mode = #tpu.pipeline_mode<synchronous>, transform_indices = @transform_8, window_bounds = array<i64: 1, 1>}, {transform_indices = @transform_9, window_bounds = array<i64: 128, 1>}]} {
    %c0 = arith.constant 0 : index
    %c0_0 = arith.constant 0 : index
    %0 = vector.load %arg1[%c0, %c0_0] : memref<128x1xi32, #tpu.memory_space<vmem>>, vector<128x1xi32>
    %c0_1 = arith.constant 0 : index
    %c0_2 = arith.constant 0 : index
    %1 = vector.load %arg2[%c0_1, %c0_2] : memref<128x1xi32, #tpu.memory_space<vmem>>, vector<128x1xi32>
    %2 = tpu.iota {dimensions = array<i32: 1>} : vector<128x128xi32>
    %3 = vector.broadcast %0 : vector<128x1xi32> to vector<128x128xi32>
    %4 = arith.cmpi eq, %2, %3 : vector<128x128xi32>
    %5 = arith.extui %4 : vector<128x128xi1> to vector<128x128xi32>
    %6 = arith.sitofp %5 : vector<128x128xi32> to vector<128x128xf32>
    %7 = arith.truncf %6 : vector<128x128xf32> to vector<128x128xbf16>
    %8 = tpu.iota {dimensions = array<i32: 1>} : vector<128x256xi32>
    %9 = vector.broadcast %1 : vector<128x1xi32> to vector<128x256xi32>
    %10 = arith.cmpi eq, %8, %9 : vector<128x256xi32>
    %11 = arith.extui %10 : vector<128x256xi1> to vector<128x256xi32>
    %12 = arith.sitofp %11 : vector<128x256xi32> to vector<128x256xf32>
    %13 = arith.truncf %12 : vector<128x256xf32> to vector<128x256xbf16>
    %c0_3 = arith.constant 0 : index
    %c0_4 = arith.constant 0 : index
    %14 = vector.load %arg3[%c0_3, %c0_4] : memref<128x128xbf16, #tpu.memory_space<vmem>>, vector<128x128xbf16>
    %cst = arith.constant dense<0.000000e+00> : vector<128x128xf32>
    %15 = tpu.matmul %7, %14, %cst {dimension_numbers = #tpu.dot_dimension_numbers<[1], [0], [0], [1], [0, 0, 1, 1], [], []>} : vector<128x128xbf16>, vector<128x128xbf16>, vector<128x128xf32> -> vector<128x128xf32>
    %c0_5 = arith.constant 0 : index
    %c0_6 = arith.constant 0 : index
    %16 = vector.load %arg4[%c0_5, %c0_6] : memref<256x128xbf16, #tpu.memory_space<vmem>>, vector<256x128xbf16>
    %cst_7 = arith.constant dense<0.000000e+00> : vector<128x128xf32>
    %17 = tpu.matmul %13, %16, %cst_7 {dimension_numbers = #tpu.dot_dimension_numbers<[1], [0], [0], [1], [0, 0, 1, 1], [], []>} : vector<128x256xbf16>, vector<256x128xbf16>, vector<128x128xf32> -> vector<128x128xf32>
    %18 = arith.addf %15, %17 : vector<128x128xf32>
    %c0_8 = arith.constant 0 : index
    %c0_9 = arith.constant 0 : index
    %19 = vector.load %arg5[%c0_8, %c0_9] : memref<1x128xf32, #tpu.memory_space<vmem>>, vector<1x128xf32>
    %20 = vector.broadcast %19 : vector<1x128xf32> to vector<128x128xf32>
    %21 = arith.addf %18, %20 : vector<128x128xf32>
    %cst_10 = arith.constant 0.000000e+00 : f32
    %22 = vector.broadcast %cst_10 : f32 to vector<128x128xf32>
    %23 = arith.maximumf %21, %22 : vector<128x128xf32>
    %24 = arith.truncf %23 : vector<128x128xf32> to vector<128x128xbf16>
    %c0_11 = arith.constant 0 : index
    %c0_12 = arith.constant 0 : index
    %25 = vector.load %arg6[%c0_11, %c0_12] : memref<128x128xbf16, #tpu.memory_space<vmem>>, vector<128x128xbf16>
    %cst_13 = arith.constant dense<0.000000e+00> : vector<128x128xf32>
    %26 = tpu.matmul %24, %25, %cst_13 {dimension_numbers = #tpu.dot_dimension_numbers<[1], [0], [0], [1], [0, 0, 1, 1], [], []>} : vector<128x128xbf16>, vector<128x128xbf16>, vector<128x128xf32> -> vector<128x128xf32>
    %c0_14 = arith.constant 0 : index
    %c0_15 = arith.constant 0 : index
    %27 = vector.load %arg7[%c0_14, %c0_15] : memref<1x128xf32, #tpu.memory_space<vmem>>, vector<1x128xf32>
    %28 = vector.broadcast %27 : vector<1x128xf32> to vector<128x128xf32>
    %29 = arith.addf %26, %28 : vector<128x128xf32>
    %cst_16 = arith.constant 0.000000e+00 : f32
    %30 = vector.broadcast %cst_16 : f32 to vector<128x128xf32>
    %31 = arith.maximumf %29, %30 : vector<128x128xf32>
    %c0_17 = arith.constant 0 : index
    %c0_18 = arith.constant 0 : index
    %32 = vector.load %arg8[%c0_17, %c0_18] : memref<1x128xf32, #tpu.memory_space<vmem>>, vector<1x128xf32>
    %33 = vector.broadcast %32 : vector<1x128xf32> to vector<128x128xf32>
    %34 = arith.mulf %31, %33 : vector<128x128xf32>
    %cst_19 = arith.constant dense<0.000000e+00> : vector<128xf32>
    %35 = vector.multi_reduction <add>, %34, %cst_19 [1] : vector<128x128xf32> to vector<128xf32>
    %36 = vector.shape_cast %35 : vector<128xf32> to vector<128x1xf32>
    %c0_20 = arith.constant 0 : index
    %c0_21 = arith.constant 0 : index
    %37 = vector.load %arg9[%c0_20, %c0_21] : memref<1x1xf32, #tpu.memory_space<vmem>>, vector<1x1xf32>
    %38 = vector.broadcast %37 : vector<1x1xf32> to vector<128x1xf32>
    %39 = arith.addf %36, %38 : vector<128x1xf32>
    %c0_22 = arith.constant 0 : index
    %c0_23 = arith.constant 0 : index
    %40 = vector.load %arg10[%c0_22, %c0_23] : memref<128x1xf32, #tpu.memory_space<vmem>>, vector<128x1xf32>
    tpu.vector_store %arg10[%c0_22, %c0_23], %39 {strides = array<i32>} : memref<128x1xf32, #tpu.memory_space<vmem>>, vector<128x1xf32>,
    return
  }
  func.func @transform_0(%arg0: i32) -> (i32, i32) {
    %c0_i32 = arith.constant 0 : i32
    %c0_i32_0 = arith.constant 0 : i32
    return %arg0, %c0_i32 : i32, i32
  }
  func.func @transform_1(%arg0: i32) -> (i32, i32) {
    %c0_i32 = arith.constant 0 : i32
    %c0_i32_0 = arith.constant 0 : i32
    return %arg0, %c0_i32 : i32, i32
  }
  func.func @transform_2(%arg0: i32) -> (i32, i32) {
    %c0_i32 = arith.constant 0 : i32
    %c0_i32_0 = arith.constant 0 : i32
    %c0_i32_1 = arith.constant 0 : i32
    return %c0_i32, %c0_i32_0 : i32, i32
  }
  func.func @transform_3(%arg0: i32) -> (i32, i32) {
    %c0_i32 = arith.constant 0 : i32
    %c0_i32_0 = arith.constant 0 : i32
    %c0_i32_1 = arith.constant 0 : i32
    return %c0_i32, %c0_i32_0 : i32, i32
  }
  func.func @transform_4(%arg0: i32) -> (i32, i32) {
    %c0_i32 = arith.constant 0 : i32
    %c0_i32_0 = arith.constant 0 : i32
    %c0_i32_1 = arith.constant 0 : i32
    return %c0_i32, %c0_i32_0 : i32, i32
  }
  func.func @transform_5(%arg0: i32) -> (i32, i32) {
    %c0_i32 = arith.constant 0 : i32
    %c0_i32_0 = arith.constant 0 : i32
    %c0_i32_1 = arith.constant 0 : i32
    return %c0_i32, %c0_i32_0 : i32, i32
  }
  func.func @transform_6(%arg0: i32) -> (i32, i32) {
    %c0_i32 = arith.constant 0 : i32
    %c0_i32_0 = arith.constant 0 : i32
    %c0_i32_1 = arith.constant 0 : i32
    return %c0_i32, %c0_i32_0 : i32, i32
  }
  func.func @transform_7(%arg0: i32) -> (i32, i32) {
    %c0_i32 = arith.constant 0 : i32
    %c0_i32_0 = arith.constant 0 : i32
    %c0_i32_1 = arith.constant 0 : i32
    return %c0_i32, %c0_i32_0 : i32, i32
  }
  func.func @transform_8(%arg0: i32) -> (i32, i32) {
    %c0_i32 = arith.constant 0 : i32
    %c0_i32_0 = arith.constant 0 : i32
    %c0_i32_1 = arith.constant 0 : i32
    return %c0_i32, %c0_i32_0 : i32, i32
  }
  func.func @transform_9(%arg0: i32) -> (i32, i32) {
    %c0_i32 = arith.constant 0 : i32
    %c0_i32_0 = arith.constant 0 : i32
    return %arg0, %c0_i32 : i32, i32
  }
}

</mosaic_0001>

<bundles_post_ra>
// kernel: tpu_custom_call.1
= control target key start
LH: loop header
LB: loop body
LE: loop exit
PB: predicated region body
PF: predicated region fallthrough
CT: control target
= control target key end

     0   :  { %s1852_s11 = smov 0   ;;  %s2183_s0 = inlined_call_operand.vmem [shape: s32[256,1], index: 0, kind: input, shape index: {}]   ;;  %s2184_s1 = inlined_call_operand.vmem [shape: s32[256,1], index: 1, kind: input, shape index: {}]   ;;  %s2185_s2 = inlined_call_operand.vmem [shape: bf16[128,128], index: 2, kind: input, shape index: {}]   ;;  %s2186_s3 = inlined_call_operand.vmem [shape: bf16[256,128], index: 3, kind: input, shape index: {}]   ;;  %s2187_s4 = inlined_call_operand.vmem [shape: f32[1,128], index: 4, kind: input, shape index: {}]   ;;  %s2188_s5 = inlined_call_operand.vmem [shape: bf16[128,128], index: 5, kind: input, shape index: {}]   ;;  %s2189_s6 = inlined_call_operand.vmem [shape: f32[1,128], index: 6, kind: input, shape index: {}]   ;;  %s2190_s7 = inlined_call_operand.vmem [shape: f32[1,128], index: 7, kind: input, shape index: {}]   ;;  %s2191_s8 = inlined_call_operand.<no memory space> [shape: f32[1,1], index: 8, kind: input, shape index: {}]   ;;  %s2192_s9 = inlined_call_operand.vmem [shape: f32[256,1], index: 9, kind: output, shape index: {}]  }
   0x1   :  { %v14_v0 = vstv %s2191_s8 }
   0x2   :  { %15 = vst [vmem:[#allocation2] sm:$0x1] %v14_v0 }
   0x3 LB: > { %s1440_s12 = sadd.s32 4294967295, %s1795_s11   ;;  %p1444_p0 = scmp.ge.s32.totalorder %s1795_s11, 1  ;;  %s1795_s11 = sphi %s1852_s11, %s21_s11  }
   0x4   : > { %p301_p1 = scmp.lt.s32.totalorder %s1795_s11, 3 }
   0x6   : > { %p302_p2 = pnand %p1444_p0, %p301_p1 }
   0x7   : > { %s1445_s13 = sshll.u32 (!%p302_p2), %s1440_s12, 4  ;;  %v1797_v1 = vmov (!%p302_p2), 0   ;;  %v1757_v2 = vld [vmem:[%s2186_s3 + $0x40] sm:$0xff] (!%p302_p2)   ;;  %v1759_v4 = vld [vmem:[%s2186_s3 + $0x48] sm:$0xff] (!%p302_p2)   ;;  %v1761_v6 = vld [vmem:[%s2186_s3 + $0x50] sm:$0xff] (!%p302_p2)   ;;  %v393_v58 = vlaneseq (!%p302_p2) }
   0x8   : > { %305 = sbr.rel (%p302_p2) target bundleno = 806 (0x326), region = 56  ;;  %1756 = vset.pattern.permute.xlu1 (!%p302_p2), %v1797_v1  ;;  %1755 = vset.pattern.permute.xlu0 (!%p302_p2), %v1797_v1  ;;  %p343_p3 = scmp.lt.s32.totalorder (!%p302_p2), %s1445_s13, 31  ;;  %v1758_v3 = vld [vmem:[%s2186_s3] sm:$0xff] (!%p302_p2)   ;;  %v1760_v5 = vld [vmem:[%s2186_s3 + $0x8] sm:$0xff] (!%p302_p2)   ;;  %v1762_v11 = vld [vmem:[%s2186_s3 + $0x10] sm:$0xff] (!%p302_p2)  }
   0x9   : > { %1585 = vmatprep.subr.bf16.mxu0 (!%p302_p2), %v1757_v2  ;;  %v1763_v16 = vld [vmem:[%s2186_s3 + $0x58] sm:$0xff] (!%p302_p2)   ;;  %v1765_v20 = vld [vmem:[%s2186_s3 + $0x60] sm:$0xff] (!%p302_p2)   ;;  %v1768_v23 = vld [vmem:[%s2186_s3 + $0x68] sm:$0xff] (!%p302_p2)   ;;  %v1978_v59 = vand.u32 (!%p302_p2), 127, %v393_v58 }
   0xa   : > { %1586 = vmatpush3.bf16.msra.mxu0 (!%p302_p2), %v1758_v3  ;;  %v1764_v17 = vld [vmem:[%s2186_s3 + $0x18] sm:$0xff] (!%p302_p2)   ;;  %v1766_v21 = vld [vmem:[%s2186_s3 + $0x20] sm:$0xff] (!%p302_p2)   ;;  %v1770_v26 = vld [vmem:[%s2185_s2 + $0x8] sm:$0xff] (!%p302_p2)   ;;  %v1798_v3 = vmov (!%p302_p2), 1.0|1.0  }
   0xb   : > { %1587 = vmatprep.subr.bf16.mxu0 (!%p302_p2), %v1759_v4  ;;  %v1767_v22 = vld [vmem:[%s2185_s2] sm:$0xff] (!%p302_p2)   ;;  %v1769_v27 = vld [vmem:[%s2186_s3 + $0x28] sm:$0xff] (!%p302_p2)   ;;  %v1771_v28 = vld [vmem:[%s2186_s3 + $0x70] sm:$0xff] (!%p302_p2)   ;;  %v1981_v62 = vadd.s32 (!%p302_p2), 128, %v1978_v59 }
   0xc   : > { %1681 = vmatprep.subr.bf16.mxu1 (!%p302_p2), %v1767_v22  ;;  %v1773_v31 = vld [vmem:[%s2185_s2 + $0x10] sm:$0xff] (!%p302_p2)   ;;  %v1774_v33 = vld [vmem:[%s2186_s3 + $0x78] sm:$0xff] (!%p302_p2)   ;;  %v1777_v38 = vld [vmem:[%s2185_s2 + $0x20] sm:$0xff] (!%p302_p2)  }
   0xd   : > { %1682 = vmatpush3.bf16.msra.mxu1 (!%p302_p2), %v1767_v22  ;;  %v1772_v32 = vld [vmem:[%s2186_s3 + $0x30] sm:$0xff] (!%p302_p2)   ;;  %v1776_v34 = vld [vmem:[%s2185_s2 + $0x18] sm:$0xff] (!%p302_p2)   ;;  %v1778_v41 = vld [vmem:[%s2185_s2 + $0x28] sm:$0xff] (!%p302_p2)  }
   0xe   : > { %1588 = vmatpush3.bf16.msra.mxu0 (!%p302_p2), %v1760_v5  ;;  %1683 = vmatprep.subr.bf16.mxu1 (!%p302_p2), %v1770_v26  ;;  %v1775_v37 = vld [vmem:[%s2186_s3 + $0x38] sm:$0xff] (!%p302_p2)   ;;  %v1779_v44 = vld [vmem:[%s2185_s2 + $0x30] sm:$0xff] (!%p302_p2)  }
   0xf   : > { %s2194_s13 = smov (!%p343_p3, %s1445_s13), 31  ;;  %1589 = vmatprep.subr.bf16.mxu0 %v1761_v6  ;;  %v1780_v47 = vld [vmem:[%s2185_s2 + $0x38] sm:$0xff]  }
  0x10   : > { %s1869_s19 = sshll.u32 %s2194_s13, 3 }
  0x11   : > { %s1878_s24 = scalar_lea.vmem %s2184_s1, %s1869_s19  ;;  %s1909_s16 = scalar_lea.vmem %s2183_s0, %s1869_s19  ;;  %1684 = vmatpush3.bf16.msra.mxu1 %v1770_v26 }
  0x12   : > { %v379_v7 = vld [vmem:[%s1878_s24 + $0x10] sm:$0xff]  ;;  %v377_v8 = vld [vmem:[%s1878_s24] sm:$0xff]  ;;  %v380_v9 = vld [vmem:[%s1878_s24 + $0x18] sm:$0xff]  ;;  %1590 = vmatpush3.bf16.msra.mxu0 %v1762_v11  ;;  %1685 = vmatprep.subr.bf16.mxu1 %v1773_v31  ;;  %s2146_s13 = scalar_lea.vmem %s2192_s9, %s1869_s19 }
  0x13   : > { %507 = vperm.xlu1 %1756, %v379_v7   ;;  %501 = vperm.xlu0 %1755, %v377_v8   ;;  %v378_v10 = vld [vmem:[%s1878_s24 + $0x8] sm:$0xff]  ;;  %v381_v13 = vld [vmem:[%s1878_s24 + $0x20] sm:$0xff]  ;;  %v384_v14 = vld [vmem:[%s1878_s24 + $0x38] sm:$0xff] }
  0x14   : > { %v382_v12 = vld [vmem:[%s1878_s24 + $0x28] sm:$0xff]  ;;  %v383_v15 = vld [vmem:[%s1878_s24 + $0x30] sm:$0xff]  ;;  %v385_v19 = vld [vmem:[%s1878_s24 + $0x40] sm:$0xff]  ;;  %1591 = vmatprep.subr.bf16.mxu0 %v1763_v16 }
  0x15   : > { %v386_v18 = vld [vmem:[%s1878_s24 + $0x48] sm:$0xff]  ;;  %v361_v25 = vld [vmem:[%s1909_s16] sm:$0xff]  ;;  %v364_v29 = vld [vmem:[%s1909_s16 + $0x18] sm:$0xff]  ;;  %1686 = vmatpush3.bf16.msra.mxu1 %v1773_v31 }
  0x16   : > { %1592 = vmatpush3.bf16.msra.mxu0 %v1764_v17  ;;  %v362_v24 = vld [vmem:[%s1909_s16 + $0x8] sm:$0xff]  ;;  %v363_v30 = vld [vmem:[%s1909_s16 + $0x10] sm:$0xff]  ;;  %v388_v35 = vld [vmem:[%s1878_s24 + $0x58] sm:$0xff]  ;;  %1687 = vmatprep.subr.bf16.mxu1 %v1776_v34 }
  0x17   : > { %510 = vperm.xlu1 %1756, %v380_v9   ;;  %504 = vperm.xlu0 %1755, %v378_v10   ;;  %v387_v36 = vld [vmem:[%s1878_s24 + $0x50] sm:$0xff]  ;;  %v366_v39 = vld [vmem:[%s1909_s16 + $0x28] sm:$0xff]  ;;  %v365_v40 = vld [vmem:[%s1909_s16 + $0x20] sm:$0xff] }
  0x18   : > { %1593 = vmatprep.subr.bf16.mxu0 %v1765_v20  ;;  %v368_v42 = vld [vmem:[%s1909_s16 + $0x38] sm:$0xff]  ;;  %v367_v43 = vld [vmem:[%s1909_s16 + $0x30] sm:$0xff]  ;;  %v390_v45 = vld [vmem:[%s1878_s24 + $0x68] sm:$0xff] }
  0x19   : > { %1688 = vmatpush3.bf16.msra.mxu1 %v1776_v34  ;;  %v389_v46 = vld [vmem:[%s1878_s24 + $0x60] sm:$0xff]  ;;  %v370_v48 = vld [vmem:[%s1909_s16 + $0x48] sm:$0xff]  ;;  %v372_v50 = vld [vmem:[%s1909_s16 + $0x58] sm:$0xff] }
  0x1a   : > { %1594 = vmatpush3.bf16.msra.mxu0 %v1766_v21  ;;  %1689 = vmatprep.subr.bf16.mxu1 %v1777_v38  ;;  %v369_v49 = vld [vmem:[%s1909_s16 + $0x40] sm:$0xff]  ;;  %v371_v51 = vld [vmem:[%s1909_s16 + $0x50] sm:$0xff]  ;;  %v392_v52 = vld [vmem:[%s1878_s24 + $0x78] sm:$0xff] }
  0x1b   : > { %516 = vperm.xlu1 %1756, %v382_v12   ;;  %513 = vperm.xlu0 %1755, %v381_v13   ;;  %v391_v53 = vld [vmem:[%s1878_s24 + $0x70] sm:$0xff]  ;;  %v374_v54 = vld [vmem:[%s1909_s16 + $0x68] sm:$0xff]  ;;  %v373_v55 = vld [vmem:[%s1909_s16 + $0x60] sm:$0xff] }
  0x1c   : > { %1595 = vmatprep.subr.bf16.mxu0 %v1768_v23  ;;  %v376_v56 = vld [vmem:[%s1909_s16 + $0x78] sm:$0xff]  ;;  %v375_v57 = vld [vmem:[%s1909_s16 + $0x70] sm:$0xff]  ;;  %v1782_v31 = vld [vmem:[%s2188_s5 + $0x8] sm:$0xff]  }
  0x1d   : > { %1690 = vmatpush3.bf16.msra.mxu1 %v1777_v38  ;;  %v1785_v34 = vld [vmem:[%s2188_s5 + $0x20] sm:$0xff]  }
  0x1e   : > { %1596 = vmatpush3.bf16.msra.mxu0 %v1769_v27  ;;  %1691 = vmatprep.subr.bf16.mxu1 %v1778_v41 }
  0x1f   : > { %522 = vperm.xlu1 %1756, %v384_v14   ;;  %519 = vperm.xlu0 %1755, %v383_v15  }
  0x20   : > { %1597 = vmatprep.subr.bf16.mxu0 %v1771_v28 }
  0x21   : > { %1692 = vmatpush3.bf16.msra.mxu1 %v1778_v41 }
  0x22   : > { %1598 = vmatpush3.bf16.msra.mxu0 %v1772_v32  ;;  %1693 = vmatprep.subr.bf16.mxu1 %v1779_v44  ;;  %v1783_v32 = vld [vmem:[%s2188_s5 + $0x10] sm:$0xff]  }
  0x23   : > { %528 = vperm.xlu1 %1756, %v386_v18   ;;  %525 = vperm.xlu0 %1755, %v385_v19  }
  0x24   : > { %1599 = vmatprep.subr.bf16.mxu0 %v1774_v33  ;;  %v1784_v33 = vld [vmem:[%s2188_s5 + $0x18] sm:$0xff]  }
  0x25   : > { %1694 = vmatpush3.bf16.msra.mxu1 %v1779_v44 }
  0x26   : > { %1600 = vmatpush3.bf16.msra.mxu0 %v1775_v37  ;;  %1695 = vmatprep.subr.bf16.mxu1 %v1780_v47  ;;  %v1788_v37 = vld [vmem:[%s2188_s5 + $0x38] sm:$0xff]  }
  0x27   : > { %399 = vperm.xlu1 %1756, %v362_v24   ;;  %396 = vperm.xlu0 %1755, %v361_v25  }
  0x29   : > { %1696 = vmatpush3.bf16.msra.mxu1 %v1780_v47 }
  0x2b   : > { %405 = vperm.xlu1 %1756, %v364_v29   ;;  %402 = vperm.xlu0 %1755, %v363_v30   ;;  %v1781_v30 = vld [vmem:[%s2188_s5] sm:$0xff]  }
  0x2c   : > { %1713 = vmatprep.subr.bf16.mxu1 %v1781_v30 }
  0x2f   : > { %534 = vperm.xlu1 %1756, %v388_v35   ;;  %531 = vperm.xlu0 %1755, %v387_v36   ;;  %v1786_v35 = vld [vmem:[%s2188_s5 + $0x28] sm:$0xff]   ;;  %v1787_v36 = vld [vmem:[%s2188_s5 + $0x30] sm:$0xff]  }
  0x33   : > { %411 = vperm.xlu1 %1756, %v366_v39   ;;  %408 = vperm.xlu0 %1755, %v365_v40  }
  0x37   : > { %417 = vperm.xlu1 %1756, %v368_v42   ;;  %414 = vperm.xlu0 %1755, %v367_v43  }
  0x3b   : > { %540 = vperm.xlu1 %1756, %v390_v45   ;;  %537 = vperm.xlu0 %1755, %v389_v46  }
  0x3f   : > { %423 = vperm.xlu1 %1756, %v370_v48   ;;  %420 = vperm.xlu0 %1755, %v369_v49  }
  0x43   : > { %429 = vperm.xlu1 %1756, %v372_v50   ;;  %426 = vperm.xlu0 %1755, %v371_v51  }
  0x47   : > { %546 = vperm.xlu1 %1756, %v392_v52   ;;  %543 = vperm.xlu0 %1755, %v391_v53   ;;  %v2082_v52 = vld [vmem:[%s2187_s4] ss:$0 sm:$0xff] }
  0x4b   : > { %435 = vperm.xlu1 %1756, %v374_v54   ;;  %432 = vperm.xlu0 %1755, %v373_v55  }
  0x4f   : > { %441 = vperm.xlu1 %1756, %v376_v56   ;;  %438 = vperm.xlu0 %1755, %v375_v57  }
  0x92   : > { %v508_v60 = vpop.permute.xlu1 %507  ;;  %v502_v61 = vpop.permute.xlu0 %501 }
  0x93   : > { %vm548_vm2 = vcmp.eq.s32.totalorder %v1978_v59, %v502_v61  ;;  %vm549_vm5 = vcmp.eq.s32.totalorder %v1981_v62, %v502_v61  ;;  %vm553_vm7 = vcmp.eq.s32.totalorder %v1981_v62, %v508_v60  ;;  %vm552_vm12 = vcmp.eq.s32.totalorder %v1978_v59, %v508_v60 }
  0x96   : > { %v511_v63 = vpop.permute.xlu1 %510  ;;  %v505_v0 = vpop.permute.xlu0 %504 }
  0x97   : > { %vm550_vm0 = vcmp.eq.s32.totalorder %v1978_v59, %v505_v0  ;;  %vm551_vm1 = vcmp.eq.s32.totalorder %v1981_v62, %v505_v0  ;;  %vm555_vm3 = vcmp.eq.s32.totalorder %v1981_v62, %v511_v63  ;;  %vm554_vm9 = vcmp.eq.s32.totalorder %v1978_v59, %v511_v63 }
  0x98   : > { %vm1517_vm4 = vmpackc.low %vm550_vm0, %vm548_vm2 }
  0x99   : > { %vm1515_vm6 = vmpackc.low %vm551_vm1, %vm549_vm5 }
  0x9a   : > { %v517_v1 = vpop.permute.xlu1 %516  ;;  %v514_v2 = vpop.permute.xlu0 %513  ;;  %1516 = vmatprep.mubr.msk.bf16.mxu0 %vm1515_vm6, %v1798_v3  ;;  %vm1519_vm8 = vmpackc.low %vm555_vm3, %vm553_vm7 }
  0x9b   : > { %1518 = vmatmul.mubr.msk.bf16.vlgmr.msra.gmra.mrb[0].mxu0 %vm1517_vm4, %v1798_v3  ;;  %vm559_vm10 = vcmp.eq.s32.totalorder %v1981_v62, %v517_v1  ;;  %vm557_vm11 = vcmp.eq.s32.totalorder %v1981_v62, %v514_v2  ;;  %vm1521_vm13 = vmpackc.low %vm554_vm9, %vm552_vm12  ;;  %vm558_vm1 = vcmp.eq.s32.totalorder %v1978_v59, %v517_v1  ;;  %vm556_vm2 = vcmp.eq.s32.totalorder %v1978_v59, %v514_v2 }
  0x9c   : > { %1520 = vmatprep.mubr.msk.bf16.mxu0 %vm1519_vm8, %v1798_v3  ;;  %vm1523_vm14 = vmpackc.low %vm559_vm10, %vm557_vm11 }
  0x9d   : > { %vm1525_vm6 = vmpackc.low %vm558_vm1, %vm556_vm2 }
  0x9e   : > { %v523_v4 = vpop.permute.xlu1 %522  ;;  %v520_v5 = vpop.permute.xlu0 %519 }
  0x9f   : > { %vm563_vm4 = vcmp.eq.s32.totalorder %v1981_v62, %v523_v4  ;;  %vm561_vm5 = vcmp.eq.s32.totalorder %v1981_v62, %v520_v5  ;;  %vm562_vm11 = vcmp.eq.s32.totalorder %v1978_v59, %v523_v4  ;;  %vm560_vm12 = vcmp.eq.s32.totalorder %v1978_v59, %v520_v5 }
  0xa0   : > { %vm1527_vm10 = vmpackc.low %vm563_vm4, %vm561_vm5 }
  0xa2   : > { %v529_v6 = vpop.permute.xlu1 %528  ;;  %v526_v7 = vpop.permute.xlu0 %525 }
  0xa3   : > { %1522 = vmatmul.mubr.msk.bf16.gmra.mrb[4].mxu0 %vm1521_vm13, %v1798_v3  ;;  %vm567_vm13 = vcmp.eq.s32.totalorder %v1981_v62, %v529_v6 }
  0xa4   : > { %1524 = vmatprep.mubr.msk.bf16.mxu0 %vm1523_vm14, %v1798_v3  ;;  %vm565_vm14 = vcmp.eq.s32.totalorder %v1981_v62, %v526_v7 }
  0xa6   : > { %v400_v8 = vpop.permute.xlu1 %399  ;;  %v397_v9 = vpop.permute.xlu0 %396 }
  0xa7   : > { %vm444_vm15 = vcmp.eq.s32.totalorder %v1978_v59, %v400_v8  ;;  %vm443_vm0 = vcmp.eq.s32.totalorder %v1978_v59, %v397_v9 }
  0xa8   : > { %vm1555_vm3 = vmpackc.low %vm444_vm15, %vm443_vm0 }
  0xa9   : > { %1697 = vmatprep.mubr.msk.bf16.mxu1 %vm1555_vm3, %v1798_v3  ;;  %vm1529_vm15 = vmpackc.low %vm562_vm11, %vm560_vm12 }
  0xaa   : > { %v406_v10 = vpop.permute.xlu1 %405  ;;  %v403_v11 = vpop.permute.xlu0 %402  ;;  %vm1531_vm3 = vmpackc.low %vm567_vm13, %vm565_vm14 }
  0xab   : > { %vm446_vm7 = vcmp.eq.s32.totalorder %v1978_v59, %v406_v10  ;;  %vm445_vm8 = vcmp.eq.s32.totalorder %v1978_v59, %v403_v11  ;;  %1526 = vmatmul.mubr.msk.bf16.gmra.mrb[8].mxu0 %vm1525_vm6, %v1798_v3 }
  0xac   : > { %vm1557_vm9 = vmpackc.low %vm446_vm7, %vm445_vm8  ;;  %1528 = vmatprep.mubr.msk.bf16.mxu0 %vm1527_vm10, %v1798_v3  ;;  %vm566_vm7 = vcmp.eq.s32.totalorder %v1978_v59, %v529_v6  ;;  %vm564_vm8 = vcmp.eq.s32.totalorder %v1978_v59, %v526_v7 }
  0xad   : > { %1698 = vmatmul.mubr.msk.bf16.vlgmr.msra.gmra.mrb[0].mxu1 %vm1557_vm9, %v1798_v3  ;;  %vm1533_vm11 = vmpackc.low %vm566_vm7, %vm564_vm8 }
  0xae   : > { %v535_v12 = vpop.permute.xlu1 %534  ;;  %v532_v13 = vpop.permute.xlu0 %531  ;;  %1714 = vmatpush3.bf16.msra.mxu1 %v1781_v30 }
  0xaf   : > { %vm571_vm9 = vcmp.eq.s32.totalorder %v1981_v62, %v535_v12  ;;  %vm569_vm10 = vcmp.eq.s32.totalorder %v1981_v62, %v532_v13  ;;  %1715 = vmatprep.subr.bf16.mxu1 %v1782_v31 }
  0xb0   : > { %vm1535_vm12 = vmpackc.low %vm571_vm9, %vm569_vm10 }
  0xb2   : > { %v412_v14 = vpop.permute.xlu1 %411  ;;  %v409_v15 = vpop.permute.xlu0 %408  ;;  %1716 = vmatpush3.bf16.msra.mxu1 %v1782_v31 }
  0xb3   : > { %vm448_vm0 = vcmp.eq.s32.totalorder %v1978_v59, %v412_v14  ;;  %vm447_vm1 = vcmp.eq.s32.totalorder %v1978_v59, %v409_v15  ;;  %1530 = vmatmul.mubr.msk.bf16.gmra.mrb[12].mxu0 %vm1529_vm15, %v1798_v3  ;;  %vm570_vm15 = vcmp.eq.s32.totalorder %v1978_v59, %v535_v12  ;;  %1717 = vmatprep.subr.bf16.mxu1 %v1783_v32 }
  0xb4   : > { %vm1559_vm2 = vmpackc.low %vm448_vm0, %vm447_vm1  ;;  %1532 = vmatprep.mubr.msk.bf16.mxu0 %vm1531_vm3, %v1798_v3  ;;  %vm568_vm0 = vcmp.eq.s32.totalorder %v1978_v59, %v532_v13 }
  0xb5   : > { %1701 = vmatprep.mubr.msk.bf16.mxu1 %vm1559_vm2, %v1798_v3 }
  0xb6   : > { %v418_v16 = vpop.permute.xlu1 %417  ;;  %v415_v17 = vpop.permute.xlu0 %414  ;;  %1718 = vmatpush3.bf16.msra.mxu1 %v1783_v32 }
  0xb7   : > { %vm450_vm4 = vcmp.eq.s32.totalorder %v1978_v59, %v418_v16  ;;  %vm449_vm5 = vcmp.eq.s32.totalorder %v1978_v59, %v415_v17  ;;  %1719 = vmatprep.subr.bf16.mxu1 %v1784_v33 }
  0xb8   : > { %vm1561_vm6 = vmpackc.low %vm450_vm4, %vm449_vm5 }
  0xb9   : > { %1702 = vmatmul.mubr.msk.bf16.gmra.mrb[4].mxu1 %vm1561_vm6, %v1798_v3  ;;  %vm1537_vm4 = vmpackc.low %vm570_vm15, %vm568_vm0 }
  0xba   : > { %v541_v18 = vpop.permute.xlu1 %540  ;;  %v538_v19 = vpop.permute.xlu0 %537  ;;  %1720 = vmatpush3.bf16.msra.mxu1 %v1784_v33 }
  0xbb   : > { %1534 = vmatmul.mubr.msk.bf16.gmra.mrb[16].mxu0 %vm1533_vm11, %v1798_v3  ;;  %vm575_vm2 = vcmp.eq.s32.totalorder %v1981_v62, %v541_v18  ;;  %vm573_vm3 = vcmp.eq.s32.totalorder %v1981_v62, %v538_v19  ;;  %vm574_vm9 = vcmp.eq.s32.totalorder %v1978_v59, %v541_v18  ;;  %vm572_vm10 = vcmp.eq.s32.totalorder %v1978_v59, %v538_v19 }
  0xbc   : > { %1536 = vmatprep.mubr.msk.bf16.mxu0 %vm1535_vm12, %v1798_v3  ;;  %vm1539_vm8 = vmpackc.low %vm575_vm2, %vm573_vm3  ;;  %1721 = vmatprep.subr.bf16.mxu1 %v1785_v34 }
  0xbe   : > { %v424_v20 = vpop.permute.xlu1 %423  ;;  %v421_v21 = vpop.permute.xlu0 %420  ;;  %1722 = vmatpush3.bf16.msra.mxu1 %v1785_v34 }
  0xbf   : > { %vm452_vm13 = vcmp.eq.s32.totalorder %v1978_v59, %v424_v20  ;;  %vm451_vm14 = vcmp.eq.s32.totalorder %v1978_v59, %v421_v21  ;;  %1723 = vmatprep.subr.bf16.mxu1 %v1786_v35 }
  0xc0   : > { %vm1563_vm1 = vmpackc.low %vm452_vm13, %vm451_vm14 }
  0xc1   : > { %1705 = vmatprep.mubr.msk.bf16.mxu1 %vm1563_vm1, %v1798_v3  ;;  %vm1541_vm13 = vmpackc.low %vm574_vm9, %vm572_vm10 }
  0xc2   : > { %v430_v22 = vpop.permute.xlu1 %429  ;;  %v427_v23 = vpop.permute.xlu0 %426  ;;  %1724 = vmatpush3.bf16.msra.mxu1 %v1786_v35 }
  0xc3   : > { %vm454_vm5 = vcmp.eq.s32.totalorder %v1978_v59, %v430_v22  ;;  %vm453_vm6 = vcmp.eq.s32.totalorder %v1978_v59, %v427_v23  ;;  %1538 = vmatmul.mubr.msk.bf16.gmra.mrb[20].mxu0 %vm1537_vm4, %v1798_v3  ;;  %1725 = vmatprep.subr.bf16.mxu1 %v1787_v36 }
  0xc4   : > { %vm1565_vm7 = vmpackc.low %vm454_vm5, %vm453_vm6  ;;  %1540 = vmatprep.mubr.msk.bf16.mxu0 %vm1539_vm8, %v1798_v3  ;;  %vm1355_vm8 = vcmask 7168  }
  0xc5   : > { %1706 = vmatmul.mubr.msk.bf16.gmra.mrb[8].mxu1 %vm1565_vm7, %v1798_v3 }
  0xc6   : > { %v547_v24 = vpop.permute.xlu1 %546  ;;  %v544_v25 = vpop.permute.xlu0 %543  ;;  %1726 = vmatpush3.bf16.msra.mxu1 %v1787_v36 }
  0xc7   : > { %vm579_vm11 = vcmp.eq.s32.totalorder %v1981_v62, %v547_v24  ;;  %vm577_vm12 = vcmp.eq.s32.totalorder %v1981_v62, %v544_v25  ;;  %vm578_vm5 = vcmp.eq.s32.totalorder %v1978_v59, %v547_v24  ;;  %vm576_vm6 = vcmp.eq.s32.totalorder %v1978_v59, %v544_v25  ;;  %1727 = vmatprep.subr.bf16.mxu1 %v1788_v37 }
  0xc8   : > { %vm1543_vm1 = vmpackc.low %vm579_vm11, %vm577_vm12 }
  0xc9   : > { %vm1545_vm7 = vmpackc.low %vm578_vm5, %vm576_vm6 }
  0xca   : > { %v436_v26 = vpop.permute.xlu1 %435  ;;  %v433_v27 = vpop.permute.xlu0 %432  ;;  %1728 = vmatpush3.bf16.msra.mxu1 %v1788_v37 }
  0xcb   : > { %vm456_vm14 = vcmp.eq.s32.totalorder %v1978_v59, %v436_v26  ;;  %vm455_vm15 = vcmp.eq.s32.totalorder %v1978_v59, %v433_v27  ;;  %1542 = vmatmul.mubr.msk.bf16.gmra.mrb[24].mxu0 %vm1541_vm13, %v1798_v3 }
  0xcc   : > { %vm1567_vm0 = vmpackc.low %vm456_vm14, %vm455_vm15  ;;  %1544 = vmatprep.mubr.msk.bf16.mxu0 %vm1543_vm1, %v1798_v3 }
  0xcd   : > { %1709 = vmatprep.mubr.msk.bf16.mxu1 %vm1567_vm0, %v1798_v3 }
  0xce   : > { %v442_v28 = vpop.permute.xlu1 %441  ;;  %v439_v29 = vpop.permute.xlu0 %438 }
  0xcf   : > { %vm458_vm2 = vcmp.eq.s32.totalorder %v1978_v59, %v442_v28  ;;  %vm457_vm3 = vcmp.eq.s32.totalorder %v1978_v59, %v439_v29 }
  0xd0   : > { %vm1569_vm4 = vmpackc.low %vm458_vm2, %vm457_vm3 }
  0xd1   : > { %1710 = vmatmul.mubr.msk.bf16.gmra.mrb[12].mxu1 %vm1569_vm4, %v1798_v3 }
  0xd3   : > { %1546 = vmatmul.mubr.msk.bf16.gmra.mrb[28].mxu0 %vm1545_vm7, %v1798_v3 }
 0x16e   : > { %v1601_v38 = vpop.f32.mrb[0].mxu0 }
 0x16f   : > { %v1602_v39 = vpop.f32.mrb[1].mxu0 }
 0x170   : > { %v1603_v40 = vadd.f32 %v1602_v39, %v1601_v38  ;;  %v1604_v41 = vpop.f32.mrb[2].mxu0 }
 0x171   : > { %v1605_v42 = vpop.f32.mrb[3].mxu0 }
 0x172   : > { %v1606_v43 = vadd.f32 %v1605_v42, %v1604_v41 }
 0x176   : > { %v1607_v44 = vpop.f32.mrb[4].mxu0 }
 0x177   : > { %v1608_v45 = vpop.f32.mrb[5].mxu0 }
 0x178   : > { %v1609_v46 = vadd.f32 %v1608_v45, %v1607_v44  ;;  %v1610_v47 = vpop.f32.mrb[6].mxu0 }
 0x179   : > { %v1611_v48 = vpop.f32.mrb[7].mxu0 }
 0x17a   : > { %v1612_v49 = vadd.f32 %v1611_v48, %v1610_v47 }
 0x17e   : > { %v1613_v50 = vpop.f32.mrb[8].mxu0 }
 0x17f   : > { %v1614_v53 = vpop.f32.mrb[9].mxu0 }
 0x180   : > { %v1699_v51 = vpop.f32.mrb[0].mxu1  ;;  %v1615_v56 = vadd.f32 %v1614_v53, %v1613_v50  ;;  %v1616_v57 = vpop.f32.mrb[10].mxu0 }
 0x181   : > { %v992_v54 = vadd.f32 %v1699_v51, %v1609_v46  ;;  %v983_v55 = vpop.f32.mrb[1].mxu1  ;;  %v1617_v60 = vpop.f32.mrb[11].mxu0 }
 0x182   : > { %v984_v58 = vadd.f32 %v1603_v40, %v983_v55  ;;  %v1700_v59 = vpop.f32.mrb[2].mxu1  ;;  %v1618_v0 = vadd.f32 %v1617_v60, %v1616_v57 }
 0x183   : > { %v1055_v61 = vadd.f32 %v2082_v52, %v992_v54  ;;  %v995_v62 = vadd.f32 %v1700_v59, %v1612_v49  ;;  %v986_v63 = vpop.f32.mrb[3].mxu1 }
 0x184   : > { %v1053_v1 = vadd.f32 %v2082_v52, %v984_v58  ;;  %v987_v2 = vadd.f32 %v1606_v43, %v986_v63 }
 0x185   : > { %v1056_v3 = vadd.f32 %v2082_v52, %v995_v62  ;;  %v1071_v5 = vmax.f32 %v1055_v61, 0.0 }
 0x186   : > { %v1054_v4 = vadd.f32 %v2082_v52, %v987_v2  ;;  %v1069_v7 = vmax.f32 %v1053_v1, 0.0  ;;  %v1619_v9 = vpop.f32.mrb[12].mxu0 }
 0x187   : > { %v1072_v6 = vmax.f32 %v1056_v3, 0.0  ;;  %v1620_v11 = vpop.f32.mrb[13].mxu0 }
 0x188   : > { %v1070_v8 = vmax.f32 %v1054_v4, 0.0  ;;  %v1621_v12 = vadd.f32 %v1620_v11, %v1619_v9  ;;  %v1622_v13 = vpop.f32.mrb[14].mxu0 }
 0x189   : > { %v1086_v10 = vpack.c.bf16 %v1072_v6, %v1071_v5  ;;  %v1623_v15 = vpop.f32.mrb[15].mxu0 }
 0x18a   : > { %v1085_v14 = vpack.c.bf16 %v1070_v8, %v1069_v7  ;;  %v1624_v16 = vadd.f32 %v1623_v15, %v1622_v13 }
 0x18c   : > { %v1703_v17 = vpop.f32.mrb[4].mxu1  ;;  %1729 = vmatprep.mubr.bf16.mxu1 %v1085_v14 }
 0x18d   : > { %v1008_v18 = vadd.f32 %v1703_v17, %v1621_v12  ;;  %v999_v19 = vpop.f32.mrb[5].mxu1  ;;  %1730 = vmatmul.mubr.bf16.vlgmr.msra.gmra.mrb[16].mxu1 %v1086_v10 }
 0x18e   : > { %v1000_v20 = vadd.f32 %v1615_v56, %v999_v19  ;;  %v1704_v21 = vpop.f32.mrb[6].mxu1  ;;  %v1625_v25 = vpop.f32.mrb[16].mxu0 }
 0x18f   : > { %v1059_v22 = vadd.f32 %v2082_v52, %v1008_v18  ;;  %v1011_v23 = vadd.f32 %v1704_v21, %v1624_v16  ;;  %v1002_v24 = vpop.f32.mrb[7].mxu1  ;;  %v1626_v28 = vpop.f32.mrb[17].mxu0 }
 0x190   : > { %v1057_v26 = vadd.f32 %v2082_v52, %v1000_v20  ;;  %v1003_v27 = vadd.f32 %v1618_v0, %v1002_v24  ;;  %v1627_v30 = vadd.f32 %v1626_v28, %v1625_v25  ;;  %v1628_v31 = vpop.f32.mrb[18].mxu0 }
 0x191   : > { %v1060_v29 = vadd.f32 %v2082_v52, %v1011_v23  ;;  %v1075_v33 = vmax.f32 %v1059_v22, 0.0  ;;  %v1629_v35 = vpop.f32.mrb[19].mxu0 }
 0x192   : > { %v1058_v32 = vadd.f32 %v2082_v52, %v1003_v27  ;;  %v1073_v36 = vmax.f32 %v1057_v26, 0.0  ;;  %v1630_v38 = vadd.f32 %v1629_v35, %v1628_v31 }
 0x193   : > { %v1076_v34 = vmax.f32 %v1060_v29, 0.0 }
 0x194   : > { %v1074_v37 = vmax.f32 %v1058_v32, 0.0  ;;  %v2103_v32 = vld [vmem:[%s2189_s6] ss:$0 sm:$0xff] }
 0x195   : > { %v1088_v39 = vpack.c.bf16 %v1076_v34, %v1075_v33 }
 0x196   : > { %v1087_v40 = vpack.c.bf16 %v1074_v37, %v1073_v36  ;;  %v1631_v41 = vpop.f32.mrb[20].mxu0 }
 0x197   : > { %v1632_v43 = vpop.f32.mrb[21].mxu0 }
 0x198   : > { %v1707_v42 = vpop.f32.mrb[8].mxu1  ;;  %1733 = vmatprep.mubr.bf16.mxu1 %v1087_v40  ;;  %v1633_v45 = vadd.f32 %v1632_v43, %v1631_v41  ;;  %v1634_v46 = vpop.f32.mrb[22].mxu0 }
 0x199   : > { %v1015_v44 = vpop.f32.mrb[9].mxu1  ;;  %1734 = vmatmul.mubr.bf16.gmra.mrb[20].mxu1 %v1088_v39  ;;  %v1635_v49 = vpop.f32.mrb[23].mxu0 }
 0x19a   : > { %v1016_v47 = vadd.f32 %v1627_v30, %v1015_v44  ;;  %v1708_v48 = vpop.f32.mrb[10].mxu1  ;;  %v1636_v51 = vadd.f32 %v1635_v49, %v1634_v46  ;;  %v1024_v53 = vadd.f32 %v1707_v42, %v1633_v45 }
 0x19b   : > { %v1018_v50 = vpop.f32.mrb[11].mxu1 }
 0x19c   : > { %v1061_v54 = vadd.f32 %v2082_v52, %v1016_v47  ;;  %v1019_v55 = vadd.f32 %v1630_v38, %v1018_v50  ;;  %v1063_v56 = vadd.f32 %v2082_v52, %v1024_v53  ;;  %v1027_v57 = vadd.f32 %v1708_v48, %v1636_v51 }
 0x19e   : > { %v1062_v58 = vadd.f32 %v2082_v52, %v1019_v55  ;;  %v1077_v59 = vmax.f32 %v1061_v54, 0.0  ;;  %v1064_v60 = vadd.f32 %v2082_v52, %v1027_v57  ;;  %v1637_v62 = vpop.f32.mrb[24].mxu0  ;;  %v1079_v0 = vmax.f32 %v1063_v56, 0.0 }
 0x19f   : > { %v1638_v63 = vpop.f32.mrb[25].mxu0 }
 0x1a0   : > { %v1078_v61 = vmax.f32 %v1062_v58, 0.0  ;;  %v1080_v1 = vmax.f32 %v1064_v60, 0.0  ;;  %v1639_v2 = vadd.f32 %v1638_v63, %v1637_v62  ;;  %v1640_v3 = vpop.f32.mrb[26].mxu0 }
 0x1a1   : > { %v1641_v5 = vpop.f32.mrb[27].mxu0 }
 0x1a2   : > { %v1089_v4 = vpack.c.bf16 %v1078_v61, %v1077_v59  ;;  %v1642_v6 = vadd.f32 %v1641_v5, %v1640_v3  ;;  %v1090_v8 = vpack.c.bf16 %v1080_v1, %v1079_v0 }
 0x1a4   : > { %v1711_v7 = vpop.f32.mrb[12].mxu1  ;;  %1737 = vmatprep.mubr.bf16.mxu1 %v1089_v4 }
 0x1a5   : > { %v1031_v9 = vpop.f32.mrb[13].mxu1  ;;  %1738 = vmatmul.mubr.bf16.gmra.mrb[24].mxu1 %v1090_v8 }
 0x1a6   : > { %v1032_v10 = vadd.f32 %v1639_v2, %v1031_v9  ;;  %v1712_v11 = vpop.f32.mrb[14].mxu1  ;;  %v1643_v13 = vpop.f32.mrb[28].mxu0 }
 0x1a7   : > { %v1034_v12 = vpop.f32.mrb[15].mxu1  ;;  %v1644_v16 = vpop.f32.mrb[29].mxu0 }
 0x1a8   : > { %v1065_v14 = vadd.f32 %v2082_v52, %v1032_v10  ;;  %v1035_v15 = vadd.f32 %v1642_v6, %v1034_v12  ;;  %v1645_v17 = vadd.f32 %v1644_v16, %v1643_v13  ;;  %v1646_v18 = vpop.f32.mrb[30].mxu0 }
 0x1a9   : > { %v1647_v20 = vpop.f32.mrb[31].mxu0 }
 0x1aa   : > { %v1066_v19 = vadd.f32 %v2082_v52, %v1035_v15  ;;  %v1081_v21 = vmax.f32 %v1065_v14, 0.0  ;;  %v1040_v22 = vadd.f32 %v1711_v7, %v1645_v17  ;;  %v1648_v24 = vadd.f32 %v1647_v20, %v1646_v18 }
 0x1ac   : > { %v1082_v23 = vmax.f32 %v1066_v19, 0.0  ;;  %v1067_v25 = vadd.f32 %v2082_v52, %v1040_v22  ;;  %v1043_v26 = vadd.f32 %v1712_v11, %v1648_v24 }
 0x1ae   : > { %v1091_v27 = vpack.c.bf16 %v1082_v23, %v1081_v21  ;;  %v1068_v28 = vadd.f32 %v2082_v52, %v1043_v26  ;;  %v1083_v29 = vmax.f32 %v1067_v25, 0.0  ;;  %v2110_v52 = vld [vmem:[%s2190_s7] ss:$0 sm:$0xff] }
 0x1b0   : > { %1741 = vmatprep.mubr.bf16.mxu1 %v1091_v27  ;;  %v1084_v30 = vmax.f32 %v1068_v28, 0.0 }
 0x1b2   : > { %v1092_v31 = vpack.c.bf16 %v1084_v30, %v1083_v29 }
 0x1b4   : > { %1742 = vmatmul.mubr.bf16.gmra.mrb[28].mxu1 %v1092_v31 }
 0x260   : > { %v1731_v33 = vpop.f32.mrb[16].mxu1 }
 0x261   : > { %v1207_v34 = vadd.f32 %v1731_v33, %v2103_v32  ;;  %v1198_v35 = vpop.f32.mrb[17].mxu1 }
 0x262   : > { %v1199_v36 = vadd.f32 %v2103_v32, %v1198_v35  ;;  %v1732_v37 = vpop.f32.mrb[18].mxu1  ;;  %v1582_v35 = vld [vmem:[#allocation2] ss:$0 sm:$0xff] }
 0x263   : > { %v1263_v38 = vmax.f32 %v1207_v34, 0.0  ;;  %v1201_v39 = vpop.f32.mrb[19].mxu1  ;;  %v1210_v42 = vadd.f32 %v1732_v37, %v2103_v32 }
 0x264   : > { %v1202_v40 = vadd.f32 %v2103_v32, %v1201_v39  ;;  %v1261_v41 = vmax.f32 %v1199_v36, 0.0 }
 0x265   : > { %v1286_v43 = vmul.f32 %v2110_v52, %v1263_v38  ;;  %v1264_v46 = vmax.f32 %v1210_v42, 0.0 }
 0x266   : > { %v1262_v44 = vmax.f32 %v1202_v40, 0.0  ;;  %v1284_v47 = vmul.f32 %v2110_v52, %v1261_v41 }
 0x267   : > { %1304 = vadd.xlane.f32.xlu0 %v1286_v43  ;;  %v1287_v51 = vmul.f32 %v2110_v52, %v1264_v46 }
 0x268   : > { %v1285_v45 = vmul.f32 %v2110_v52, %v1262_v44 }
 0x26a   : > { %1302 = vadd.xlane.f32.xlu1 %v1285_v45 }
 0x26b   : > { %1300 = vadd.xlane.f32.xlu0 %v1284_v47 }
 0x26c   : > { %v1735_v48 = vpop.f32.mrb[20].mxu1 }
 0x26d   : > { %v1223_v49 = vadd.f32 %v1735_v48, %v2103_v32  ;;  %v1214_v50 = vpop.f32.mrb[21].mxu1 }
 0x26e   : > { %v1215_v53 = vadd.f32 %v2103_v32, %v1214_v50  ;;  %v1736_v54 = vpop.f32.mrb[22].mxu1 }
 0x26f   : > { %v1267_v55 = vmax.f32 %v1223_v49, 0.0  ;;  %v1226_v56 = vadd.f32 %v1736_v54, %v2103_v32  ;;  %v1217_v57 = vpop.f32.mrb[23].mxu1  ;;  %1306 = vadd.xlane.f32.xlu0 %v1287_v51 }
 0x270   : > { %v1218_v58 = vadd.f32 %v2103_v32, %v1217_v57  ;;  %v1265_v59 = vmax.f32 %v1215_v53, 0.0 }
 0x271   : > { %v1268_v60 = vmax.f32 %v1226_v56, 0.0  ;;  %v1290_v61 = vmul.f32 %v2110_v52, %v1267_v55 }
 0x272   : > { %v1266_v62 = vmax.f32 %v1218_v58, 0.0  ;;  %v1288_v0 = vmul.f32 %v2110_v52, %v1265_v59 }
 0x273   : > { %1312 = vadd.xlane.f32.xlu1 %v1290_v61  ;;  %v1291_v63 = vmul.f32 %v2110_v52, %v1268_v60 }
 0x274   : > { %v1289_v1 = vmul.f32 %v2110_v52, %v1266_v62 }
 0x275   : > { %1314 = vadd.xlane.f32.xlu0 %v1291_v63 }
 0x277   : > { %1308 = vadd.xlane.f32.xlu1 %v1288_v0 }
 0x278   : > { %v1739_v2 = vpop.f32.mrb[24].mxu1 }
 0x279   : > { %1310 = vadd.xlane.f32.xlu0 %v1289_v1  ;;  %v1239_v3 = vadd.f32 %v1739_v2, %v2103_v32  ;;  %v1230_v4 = vpop.f32.mrb[25].mxu1 }
 0x27a   : > { %v1231_v5 = vadd.f32 %v2103_v32, %v1230_v4  ;;  %v1740_v6 = vpop.f32.mrb[26].mxu1 }
 0x27b   : > { %v1271_v7 = vmax.f32 %v1239_v3, 0.0  ;;  %v1242_v8 = vadd.f32 %v1740_v6, %v2103_v32  ;;  %v1233_v9 = vpop.f32.mrb[27].mxu1 }
 0x27c   : > { %v1234_v10 = vadd.f32 %v2103_v32, %v1233_v9  ;;  %v1269_v11 = vmax.f32 %v1231_v5, 0.0 }
 0x27d   : > { %v1272_v12 = vmax.f32 %v1242_v8, 0.0  ;;  %v1294_v13 = vmul.f32 %v2110_v52, %v1271_v7 }
 0x27e   : > { %v1270_v14 = vmax.f32 %v1234_v10, 0.0  ;;  %v1292_v16 = vmul.f32 %v2110_v52, %v1269_v11 }
 0x27f   : > { %1320 = vadd.xlane.f32.xlu1 %v1294_v13  ;;  %v1295_v15 = vmul.f32 %v2110_v52, %v1272_v12 }
 0x280   : > { %v1293_v17 = vmul.f32 %v2110_v52, %v1270_v14 }
 0x281   : > { %1322 = vadd.xlane.f32.xlu0 %v1295_v15 }
 0x283   : > { %1316 = vadd.xlane.f32.xlu1 %v1292_v16 }
 0x285   : > { %1318 = vadd.xlane.f32.xlu0 %v1293_v17 }
 0x287   : > { %v1743_v18 = vpop.f32.mrb[28].mxu1 }
 0x288   : > { %v1246_v19 = vpop.f32.mrb[29].mxu1  ;;  %v1255_v20 = vadd.f32 %v1743_v18, %v2103_v32 }
 0x289   : > { %v1247_v21 = vadd.f32 %v2103_v32, %v1246_v19  ;;  %v1744_v22 = vpop.f32.mrb[30].mxu1 }
 0x28a   : > { %v1249_v23 = vpop.f32.mrb[31].mxu1  ;;  %v1258_v25 = vadd.f32 %v1744_v22, %v2103_v32  ;;  %v1275_v27 = vmax.f32 %v1255_v20, 0.0 }
 0x28b   : > { %v1273_v24 = vmax.f32 %v1247_v21, 0.0  ;;  %v1250_v26 = vadd.f32 %v2103_v32, %v1249_v23 }
 0x28c   : > { %v1276_v30 = vmax.f32 %v1258_v25, 0.0  ;;  %v1298_v33 = vmul.f32 %v2110_v52, %v1275_v27 }
 0x28d   : > { %v1274_v28 = vmax.f32 %v1250_v26, 0.0  ;;  %v1296_v29 = vmul.f32 %v2110_v52, %v1273_v24 }
 0x28e   : > { %v1299_v34 = vmul.f32 %v2110_v52, %v1276_v30 }
 0x28f   : > { %1324 = vadd.xlane.f32.xlu1 %v1296_v29  ;;  %v1297_v31 = vmul.f32 %v2110_v52, %v1274_v28 }
 0x291   : > { %1326 = vadd.xlane.f32.xlu0 %v1297_v31 }
 0x293   : > { %1328 = vadd.xlane.f32.xlu1 %v1298_v33 }
 0x295   : > { %1330 = vadd.xlane.f32.xlu0 %v1299_v34 }
 0x2f4   : > { %v1305_v32 = vpop.xlane.xlu0 %1304 }
 0x2f5   : > { %v1341_v36 = vadd.f32 %v1582_v35, %v1305_v32 }
 0x2f7   : > { %1358 = vst.msk [vmem:[%s2146_s13 + $0x10] sm:$0xff] %vm1355_vm8, %v1341_v36  ;;  %v1303_v37 = vpop.xlane.xlu1 %1302 }
 0x2f8   : > { %v1340_v52 = vadd.f32 %v1582_v35, %v1303_v37  ;;  %v1301_v38 = vpop.xlane.xlu0 %1300 }
 0x2f9   : > { %v1339_v39 = vadd.f32 %v1582_v35, %v1301_v38 }
 0x2fa   : > { %1357 = vst.msk [vmem:[%s2146_s13 + $0x8] sm:$0xff] %vm1355_vm8, %v1340_v52 }
 0x2fb   : > { %1356 = vst.msk [vmem:[%s2146_s13] sm:$0xff] %vm1355_vm8, %v1339_v39 }
 0x2fc   : > { %v1307_v40 = vpop.xlane.xlu0 %1306 }
 0x2fd   : > { %v1342_v41 = vadd.f32 %v1582_v35, %v1307_v40 }
 0x2ff   : > { %1359 = vst.msk [vmem:[%s2146_s13 + $0x18] sm:$0xff] %vm1355_vm8, %v1342_v41 }
 0x300   : > { %v1313_v42 = vpop.xlane.xlu1 %1312 }
 0x301   : > { %v1345_v43 = vadd.f32 %v1582_v35, %v1313_v42 }
 0x302   : > { %v1315_v44 = vpop.xlane.xlu0 %1314 }
 0x303   : > { %1362 = vst.msk [vmem:[%s2146_s13 + $0x30] sm:$0xff] %vm1355_vm8, %v1345_v43  ;;  %v1346_v45 = vadd.f32 %v1582_v35, %v1315_v44 }
 0x304   : > { %v1309_v46 = vpop.xlane.xlu1 %1308 }
 0x305   : > { %1363 = vst.msk [vmem:[%s2146_s13 + $0x38] sm:$0xff] %vm1355_vm8, %v1346_v45  ;;  %v1343_v47 = vadd.f32 %v1582_v35, %v1309_v46 }
 0x306   : > { %v1311_v48 = vpop.xlane.xlu0 %1310 }
 0x307   : > { %1360 = vst.msk [vmem:[%s2146_s13 + $0x20] sm:$0xff] %vm1355_vm8, %v1343_v47  ;;  %v1344_v49 = vadd.f32 %v1582_v35, %v1311_v48 }
 0x309   : > { %1361 = vst.msk [vmem:[%s2146_s13 + $0x28] sm:$0xff] %vm1355_vm8, %v1344_v49 }
 0x30c   : > { %v1321_v50 = vpop.xlane.xlu1 %1320 }
 0x30d   : > { %v1349_v51 = vadd.f32 %v1582_v35, %v1321_v50 }
 0x30e   : > { %v1323_v53 = vpop.xlane.xlu0 %1322 }
 0x30f   : > { %1366 = vst.msk [vmem:[%s2146_s13 + $0x50] sm:$0xff] %vm1355_vm8, %v1349_v51  ;;  %v1350_v54 = vadd.f32 %v1582_v35, %v1323_v53 }
 0x310   : > { %v1317_v55 = vpop.xlane.xlu1 %1316 }
 0x311   : > { %1367 = vst.msk [vmem:[%s2146_s13 + $0x58] sm:$0xff] %vm1355_vm8, %v1350_v54  ;;  %v1347_v56 = vadd.f32 %v1582_v35, %v1317_v55 }
 0x312   : > { %v1319_v57 = vpop.xlane.xlu0 %1318 }
 0x313   : > { %1364 = vst.msk [vmem:[%s2146_s13 + $0x40] sm:$0xff] %vm1355_vm8, %v1347_v56  ;;  %v1348_v58 = vadd.f32 %v1582_v35, %v1319_v57 }
 0x315   : > { %1365 = vst.msk [vmem:[%s2146_s13 + $0x48] sm:$0xff] %vm1355_vm8, %v1348_v58 }
 0x31c   : > { %v1325_v59 = vpop.xlane.xlu1 %1324 }
 0x31d   : > { %v1351_v60 = vadd.f32 %v1582_v35, %v1325_v59 }
 0x31e   : > { %v1327_v61 = vpop.xlane.xlu0 %1326 }
 0x31f   : > { %1368 = vst.msk [vmem:[%s2146_s13 + $0x60] sm:$0xff] %vm1355_vm8, %v1351_v60  ;;  %v1352_v62 = vadd.f32 %v1582_v35, %v1327_v61 }
 0x320   : > { %v1329_v63 = vpop.xlane.xlu1 %1328 }
 0x321   : > { %1369 = vst.msk [vmem:[%s2146_s13 + $0x68] sm:$0xff] %vm1355_vm8, %v1352_v62  ;;  %v1353_v0 = vadd.f32 %v1582_v35, %v1329_v63 }
 0x322   : > { %v1331_v1 = vpop.xlane.xlu0 %1330 }
 0x323   : > { %1370 = vst.msk [vmem:[%s2146_s13 + $0x70] sm:$0xff] %vm1355_vm8, %v1353_v0  ;;  %v1354_v2 = vadd.f32 %v1582_v35, %v1331_v1 }
 0x325   : > { %1371 = vst.msk [vmem:[%s2146_s13 + $0x78] sm:$0xff] %vm1355_vm8, %v1354_v2 }
 0x326 PF: > { %s21_s11 = sadd.s32 1, %s1795_s11  }
 0x327   : > { %p18_p4 = scmp.ge.s32.totalorder %s21_s11, 4  }
 0x329   :  { %20 = sbr.rel (!%p18_p4) target bundleno = 3 (0x3), region = 89 }

</bundles_post_ra>
